<compile_context>
chip_gen: v5e
topology: v5e:2x2
jax: 0.10.0
libtpu: 0.0.40
codegen_flags: <defaults>
</compile_context>

<pallas_src>
import functools
import math

import jax
import jax.numpy as jnp
from jax.experimental import pallas as pl
from jax.experimental.pallas import tpu as pltpu


# --------------------------------------------------------------------------
# Helpers
# --------------------------------------------------------------------------
def _pick_tile(total, pref, align):
    """Largest tile <= pref that divides `total` and is a multiple of `align`
    (falls back to the full extent, which is always a legal block dim)."""
    if total <= pref:
        return total
    t = (pref // align) * align
    while t >= align:
        if total % t == 0:
            return t
        t -= align
    return total


def _vmem_budget():
    """Generation-aware ceiling for vmem_limit_bytes (leave headroom for
    compiler-internal scratch; v7x only has 64 MiB VMEM per TensorCore)."""
    cap = 64 * 2**20
    try:
        cap = int(pltpu.get_tpu_info().vmem_capacity_bytes)
    except Exception:
        pass
    return max(16 * 2**20, (cap * 3) // 4)


def _vmem_limit(block_bytes, scratch_bytes=0):
    est = 2 * block_bytes + scratch_bytes          # double-buffered blocks
    return int(min(_vmem_budget(), max(16 * 2**20, 2 * est)))


# --------------------------------------------------------------------------
# Kernel 1: fused QKV projection  (M, D) @ (D, 3H) -> q,k,v each (M, H)
#            (1/sqrt(H) is already folded into the q columns of the weight)
# --------------------------------------------------------------------------
def _qkv_proj_kernel(x_ref, w_ref, q_ref, k_ref, v_ref, *, H):
    acc = jnp.dot(x_ref[...], w_ref[...], preferred_element_type=jnp.float32)
    q_ref[...] = acc[:, :H].astype(q_ref.dtype)
    k_ref[...] = acc[:, H:2 * H].astype(k_ref.dtype)
    v_ref[...] = acc[:, 2 * H:].astype(v_ref.dtype)


# --------------------------------------------------------------------------
# Kernel 2: flash-style attention, grid = (B, q-tiles, kv-tiles)
#           block_any_ref : SMEM (n_q, n_kv) int32, 0 => tile fully masked
#           bias_ref      : additive mask bias (0 / -1e30), resident or tiled
# --------------------------------------------------------------------------
def _attn_kernel(block_any_ref, q_ref, k_ref, v_ref, bias_ref, o_ref,
                 m_sc, l_sc, acc_sc, *, approx_recip, bias_resident, tq, tkv):
    qi = pl.program_id(1)
    ki = pl.program_id(2)

    @pl.when(ki == 0)
    def _init():
        m_sc[...] = jnp.full_like(m_sc, -jnp.inf)
        l_sc[...] = jnp.zeros_like(l_sc)
        acc_sc[...] = jnp.zeros_like(acc_sc)

    # Skip all compute (matmuls, exp, flash update) for fully-masked tiles.
    @pl.when(block_any_ref[qi, ki] != 0)
    def _compute():
        q = q_ref[0]                                           # (tq, H)
        k = k_ref[0]                                           # (tkv, H)
        v = v_ref[0]                                           # (tkv, H)

        # scores = q @ k^T, contracting last dims (no explicit transpose).
        s = jax.lax.dot_general(
            q, k, dimension_numbers=(((1,), (1,)), ((), ())),
            preferred_element_type=jnp.float32,
        )                                                      # (tq, tkv) f32

        # Additive mask bias (one VPU add per score).
        if bias_resident:
            bias = bias_ref[pl.ds(pl.multiple_of(qi * tq, tq), tq),
                            pl.ds(pl.multiple_of(ki * tkv, tkv), tkv)]
        else:
            bias = bias_ref[...]
        s = s + bias.astype(jnp.float32)

        # Online (flash) softmax update, statistics in f32.
        m_prev = m_sc[...]
        m_new = jnp.maximum(m_prev, jnp.max(s, axis=-1, keepdims=True))
        alpha = jnp.exp(m_prev - m_new)
        p = jnp.exp(s - m_new)
        l_sc[...] = alpha * l_sc[...] + jnp.sum(p, axis=-1, keepdims=True)
        acc_sc[...] = alpha * acc_sc[...] + jnp.dot(
            p.astype(v.dtype), v, preferred_element_type=jnp.float32)
        m_sc[...] = m_new

    @pl.when(ki == pl.num_programs(2) - 1)
    def _finalize():
        o_ref[0] = (acc_sc[...] *
                    pl.reciprocal(l_sc[...], approx=approx_recip)
                    ).astype(o_ref.dtype)


# --------------------------------------------------------------------------
# Wrapper
# --------------------------------------------------------------------------
def head_forward(x, w_q, w_k, w_v, mask, *, compute_dtype=jnp.bfloat16):
    """x: (B,T,D), w_*: (D,H), mask: (T,T) (0 => masked) -> (B,T,H)."""
    B, T, D = x.shape
    H = w_q.shape[1]
    cd = jnp.dtype(compute_dtype)
    out_dtype = x.dtype

    # ---- fused QKV projection (scale folded into Wq) ----------------------
    inv_scale = 1.0 / math.sqrt(float(H))
    w_qkv = jnp.concatenate(
        [w_q.astype(jnp.float32) * inv_scale, w_k, w_v], axis=1
    ).astype(cd)                                                # (D, 3H)
    x2d = x.reshape(B * T, D).astype(cd)                        # free reshape
    M = B * T
    tm = _pick_tile(M, 512, 16)

    proj_block_bytes = (tm * D + D * 3 * H + 3 * tm * H) * cd.itemsize
    q2d, k2d, v2d = pl.pallas_call(
        functools.partial(_qkv_proj_kernel, H=H),
        out_shape=(jax.ShapeDtypeStruct((M, H), cd),
                   jax.ShapeDtypeStruct((M, H), cd),
                   jax.ShapeDtypeStruct((M, H), cd)),
        grid_spec=pltpu.PrefetchScalarGridSpec(
            num_scalar_prefetch=0,
            grid=(M // tm,),
            in_specs=[
                pl.BlockSpec((tm, D), lambda m: (m, 0)),
                pl.BlockSpec((D, 3 * H), lambda m: (0, 0)),
            ],
            out_specs=(pl.BlockSpec((tm, H), lambda m: (m, 0)),
                       pl.BlockSpec((tm, H), lambda m: (m, 0)),
                       pl.BlockSpec((tm, H), lambda m: (m, 0))),
        ),
        compiler_params=pltpu.CompilerParams(
            dimension_semantics=("parallel",),
            vmem_limit_bytes=_vmem_limit(proj_block_bytes),
        ),
    )(x2d, w_qkv)

    q = q2d.reshape(B, T, H)      # leading-dim splits: layout-preserving
    k = k2d.reshape(B, T, H)
    v = v2d.reshape(B, T, H)

    # ---- attention tiling --------------------------------------------------
    tq = _pick_tile(T, 512, 16)      # query tile: bf16 sublane pack (16 rows)
    tkv = _pick_tile(T, 512, 128)    # kv tile: lane aligned (128) or full T
    n_q = T // tq
    n_kv = T // tkv

    # Additive bias (0 where attending allowed, -1e30 where masked) and
    # per-block "any valid" summaries (no causality assumption).
    valid = jnp.asarray(mask) != 0                              # (T, T) bool
    bias = jnp.where(valid, jnp.float32(0.0), jnp.float32(-1e30)).astype(cd)
    block_any = valid.reshape(n_q, tq, n_kv, tkv).any(axis=(1, 3))
    block_any = block_any.astype(jnp.int32)                    # (n_q, n_kv)

    # Keep the whole bias resident in VMEM when it comfortably fits
    # (generation-aware: ~12 MiB on v7x, ~24 MiB on v5e/v6e).
    bias_resident = (T * T * cd.itemsize) <= (_vmem_budget() // 4)
    if bias_resident:
        bias_spec = pl.BlockSpec((T, T), lambda b, qi, ki, blk: (0, 0))
        bias_bytes = T * T * cd.itemsize
    else:
        bias_spec = pl.BlockSpec((tq, tkv), lambda b, qi, ki, blk: (qi, ki))
        bias_bytes = tq * tkv * cd.itemsize

    attn_block_bytes = ((tq * H + 2 * tkv * H) * cd.itemsize
                        + bias_bytes
                        + tq * H * jnp.dtype(out_dtype).itemsize)
    scratch_bytes = (2 * tq + tq * H) * 4

    kernel = functools.partial(
        _attn_kernel,
        approx_recip=(cd != jnp.dtype(jnp.float32)),
        bias_resident=bias_resident,
        tq=tq, tkv=tkv,
    )

    return pl.pallas_call(
        kernel,
        out_shape=jax.ShapeDtypeStruct((B, T, H), out_dtype),
        grid_spec=pltpu.PrefetchScalarGridSpec(
            num_scalar_prefetch=1,                 # block_any -> SMEM
            grid=(B, n_q, n_kv),
            in_specs=[
                pl.BlockSpec((1, tq, H), lambda b, qi, ki, blk: (b, qi, 0)),
                pl.BlockSpec((1, tkv, H), lambda b, qi, ki, blk: (b, ki, 0)),
                pl.BlockSpec((1, tkv, H), lambda b, qi, ki, blk: (b, ki, 0)),
                bias_spec,
            ],
            out_specs=pl.BlockSpec((1, tq, H),
                                   lambda b, qi, ki, blk: (b, qi, 0)),
            scratch_shapes=[
                pltpu.VMEM((tq, 1), jnp.float32),    # running max m
                pltpu.VMEM((tq, 1), jnp.float32),    # running sum l
                pltpu.VMEM((tq, H), jnp.float32),    # f32 output accumulator
            ],
        ),
        compiler_params=pltpu.CompilerParams(
            dimension_semantics=("parallel", "parallel", "arbitrary"),
            vmem_limit_bytes=_vmem_limit(attn_block_bytes, scratch_bytes),
        ),
    )(block_any, q, k, v, bias)


def reference_forward(x, w_q, w_k, w_v, mask):
    """Pure-JAX (f32) reference mirroring the PyTorch module."""
    q = x @ w_q
    k = x @ w_k
    v = x @ w_v
    scale = math.sqrt(float(w_q.shape[1]))
    scores = jnp.einsum("btd,bsd->bts", q, k) / scale
    scores = jnp.where(mask[None, :, :] == 0, -jnp.inf, scores)
    weights = jax.nn.softmax(scores, axis=-1)
    return weights @ v


if __name__ == "__main__":
    B, T, d_model, head_size = 2, 8, 32, 16

    key = jax.random.PRNGKey(0)
    kx, kq, kk, kv = jax.random.split(key, 4)

    x = jax.random.normal(kx, (B, T, d_model), dtype=jnp.float32)

    # PyTorch Linear weight is (out, in); we store the transposed (in, out)
    # form so the kernel does x @ W directly.
    bound = 1.0 / math.sqrt(d_model)
    w_q = jax.random.uniform(kq, (d_model, head_size), jnp.float32, -bound, bound)
    w_k = jax.random.uniform(kk, (d_model, head_size), jnp.float32, -bound, bound)
    w_v = jax.random.uniform(kv, (d_model, head_size), jnp.float32, -bound, bound)

    # Causal mask: 1 where attending allowed, 0 where masked.
    mask = jnp.tril(jnp.ones((T, T), dtype=jnp.int32))

    ref = reference_forward(x, w_q, w_k, w_v, mask)

    # Exact path (f32 MXU inputs): must match the reference tightly.
    out_f32 = jax.block_until_ready(
        head_forward(x, w_q, w_k, w_v, mask, compute_dtype=jnp.float32))
    assert out_f32.shape == (B, T, head_size)
    assert jnp.allclose(out_f32, ref, atol=1e-5, rtol=1e-5), "f32 path mismatch"

    # Default performance path (bf16 MXU inputs, f32 softmax/accum).
    out_bf16 = jax.block_until_ready(head_forward(x, w_q, w_k, w_v, mask))
    assert out_bf16.shape == (B, T, head_size)
    assert jnp.allclose(out_bf16, ref, atol=2e-2, rtol=2e-2), "bf16 path mismatch"

    print("KERNEL_OK")
</pallas_src>

<mosaic_0001>
module attributes {stable_mosaic.version = 11 : i64} {
  func.func @_qkv_proj_kernel(%arg0: i32, %arg1: memref<16x32xf32, #tpu.memory_space<vmem>>, %arg2: memref<32x48xf32, #tpu.memory_space<vmem>>, %arg3: memref<16x16xf32, #tpu.memory_space<vmem>>, %arg4: memref<16x16xf32, #tpu.memory_space<vmem>>, %arg5: memref<16x16xf32, #tpu.memory_space<vmem>>) attributes {dimension_semantics = [#tpu.dimension_semantics<parallel>], iteration_bounds = array<i64: 1>, scalar_prefetch = 0 : i64, scratch_operands = 0 : i64, tpu.core_type = #tpu.core_type<tc>, window_params = [{transform_indices = @transform_0, window_bounds = array<i64: 16, 32>}, {pipeline_mode = #tpu.pipeline_mode<synchronous>, transform_indices = @transform_1, window_bounds = array<i64: 32, 48>}, {transform_indices = @transform_2, window_bounds = array<i64: 16, 16>}, {transform_indices = @transform_3, window_bounds = array<i64: 16, 16>}, {transform_indices = @transform_4, window_bounds = array<i64: 16, 16>}]} {
    %c0 = arith.constant 0 : index
    %c0_0 = arith.constant 0 : index
    %0 = vector.load %arg1[%c0, %c0_0] : memref<16x32xf32, #tpu.memory_space<vmem>>, vector<16x32xf32>
    %c0_1 = arith.constant 0 : index
    %c0_2 = arith.constant 0 : index
    %1 = vector.load %arg2[%c0_1, %c0_2] : memref<32x48xf32, #tpu.memory_space<vmem>>, vector<32x48xf32>
    %cst = arith.constant dense<0.000000e+00> : vector<16x48xf32>
    %2 = tpu.matmul %0, %1, %cst {dimension_numbers = #tpu.dot_dimension_numbers<[1], [0], [0], [1], [0, 0, 1, 1], [], []>} : vector<16x32xf32>, vector<32x48xf32>, vector<16x48xf32> -> vector<16x48xf32>
    %3 = vector.extract_strided_slice %2 {offsets = [0, 0], sizes = [16, 16], strides = [1, 1]} : vector<16x48xf32> to vector<16x16xf32>
    %c0_3 = arith.constant 0 : index
    %c0_4 = arith.constant 0 : index
    %4 = vector.load %arg3[%c0_3, %c0_4] : memref<16x16xf32, #tpu.memory_space<vmem>>, vector<16x16xf32>
    tpu.vector_store %arg3[%c0_3, %c0_4], %3 {strides = array<i32>} : memref<16x16xf32, #tpu.memory_space<vmem>>, vector<16x16xf32>,
    %5 = vector.extract_strided_slice %2 {offsets = [0, 16], sizes = [16, 16], strides = [1, 1]} : vector<16x48xf32> to vector<16x16xf32>
    %c0_5 = arith.constant 0 : index
    %c0_6 = arith.constant 0 : index
    %6 = vector.load %arg4[%c0_5, %c0_6] : memref<16x16xf32, #tpu.memory_space<vmem>>, vector<16x16xf32>
    tpu.vector_store %arg4[%c0_5, %c0_6], %5 {strides = array<i32>} : memref<16x16xf32, #tpu.memory_space<vmem>>, vector<16x16xf32>,
    %7 = vector.extract_strided_slice %2 {offsets = [0, 32], sizes = [16, 16], strides = [1, 1]} : vector<16x48xf32> to vector<16x16xf32>
    %c0_7 = arith.constant 0 : index
    %c0_8 = arith.constant 0 : index
    %8 = vector.load %arg5[%c0_7, %c0_8] : memref<16x16xf32, #tpu.memory_space<vmem>>, vector<16x16xf32>
    tpu.vector_store %arg5[%c0_7, %c0_8], %7 {strides = array<i32>} : memref<16x16xf32, #tpu.memory_space<vmem>>, vector<16x16xf32>,
    return
  }
  func.func @transform_0(%arg0: i32) -> (i32, i32) {
    %c0_i32 = arith.constant 0 : i32
    %c0_i32_0 = arith.constant 0 : i32
    return %arg0, %c0_i32 : i32, i32
  }
  func.func @transform_1(%arg0: i32) -> (i32, i32) {
    %c0_i32 = arith.constant 0 : i32
    %c0_i32_0 = arith.constant 0 : i32
    %c0_i32_1 = arith.constant 0 : i32
    return %c0_i32, %c0_i32_0 : i32, i32
  }
  func.func @transform_2(%arg0: i32) -> (i32, i32) {
    %c0_i32 = arith.constant 0 : i32
    %c0_i32_0 = arith.constant 0 : i32
    return %arg0, %c0_i32 : i32, i32
  }
  func.func @transform_3(%arg0: i32) -> (i32, i32) {
    %c0_i32 = arith.constant 0 : i32
    %c0_i32_0 = arith.constant 0 : i32
    return %arg0, %c0_i32 : i32, i32
  }
  func.func @transform_4(%arg0: i32) -> (i32, i32) {
    %c0_i32 = arith.constant 0 : i32
    %c0_i32_0 = arith.constant 0 : i32
    return %arg0, %c0_i32 : i32, i32
  }
}

</mosaic_0001>

<bundles_post_ra>
// kernel: tpu_custom_call.1
= control target key start
LH: loop header
LB: loop body
LE: loop exit
PB: predicated region body
PF: predicated region fallthrough
CT: control target
= control target key end

     0   :  { %10 = vsyncpa [#allocation3], 0  ;;  %s373_s0 = inlined_call_operand.hbm [shape: f32[16,32], index: 0, kind: input, shape index: {}]   ;;  %s374_s1 = inlined_call_operand.hbm [shape: f32[32,48], index: 1, kind: input, shape index: {}]   ;;  %s375_s2 = inlined_call_operand.hbm [shape: f32[16,16], index: 2, kind: output, shape index: {0}]   ;;  %s376_s3 = inlined_call_operand.hbm [shape: f32[16,16], index: 3, kind: output, shape index: {1}]   ;;  %s377_s4 = inlined_call_operand.hbm [shape: f32[16,16], index: 4, kind: output, shape index: {2}]  }
   0x1   :  { %11 = vsyncpa [#allocation6], 0 }
   0x2   :  { %12 = vsyncpa [#allocation4], 0 }
   0x3   :  { %13 = vsyncpa [#allocation9], 0  ;;  %s18_s17 = sshll.u32 %s373_s0, 4  ;;  %s303_s18 = smov [#allocation2]   ;;  %s19_s17 = int_to_ptr.hbm [resolvable:$true] %s18_s17 }
   0x4   :  { %s20_s19 = sshll.u32 %s303_s18, 4  ;;  %s31_s22 = sshll.u32 %s374_s1, 4  ;;  %s21_s19 = int_to_ptr.vmem [resolvable:$true] %s20_s19  ;;  %s32_s22 = int_to_ptr.hbm [resolvable:$true] %s31_s22 }
   0x5   :  { %s304_s23 = smov 128   ;;  %s305_s24 = smov 8  }
   0x6   :  { %26 = dma.hbm_to_vmem [thread:$0]  %s19_s17, 256, %s21_s19, [#allocation3], %s304_s23, %s304_s23, %s305_s24  }
   0x7   :  { %s306_s25 = smov [#allocation5]  }
   0x8   :  { %s33_s26 = sshll.u32 %s306_s25, 4  ;;  %s34_s26 = int_to_ptr.vmem [resolvable:$true] %s33_s26 }
   0x9   :  { %39 = dma.hbm_to_vmem [thread:$0]  %s32_s22, 512, %s34_s26, [#allocation6], %s304_s23, %s304_s23, %s305_s24  }
   0xa   :  { %295 = dma.done.wait [#allocation3], 256  }
   0xb   :  { %296 = vsyncadd [#allocation3], 4294967040 }
   0xc   :  { %297 = dma.done.wait [#allocation6], 512  }
   0xd   :  { %298 = vsyncadd [#allocation6], 4294966784  ;;  %v53_v0 = vld [vmem:[#allocation5 + $0x18] sm:$0xff]  ;;  %v52_v1 = vld [vmem:[#allocation5 + $0x10] sm:$0xff]  ;;  %vm54_vm0 = vcmask 261120   ;;  %vm84_vm1 = vcmask 130048  }
   0xe   :  { %73 = vmatpush.msra.mxu0 %v53_v0  ;;  %162 = vmatpush.msra.mxu1 %v53_v0  ;;  %v51_v2 = vld [vmem:[#allocation5 + $0x8] sm:$0xff]  ;;  %v50_v3 = vld [vmem:[#allocation5] sm:$0xff]  ;;  %v48_v4 = vld [vmem:[#allocation2] sm:$0xff]  ;;  %s111_s27 = sshll.u32 %s375_s2, 4  ;;  %s307_s28 = smov [#allocation7]   ;;  %s112_s27 = int_to_ptr.hbm [resolvable:$true] %s111_s27 }
   0xf   :  { %v49_v5 = vld [vmem:[#allocation2 + $0x8] sm:$0xff]  ;;  %s109_s29 = sshll.u32 %s307_s28, 4  ;;  %s308_s30 = smov 96   ;;  %s110_s29 = int_to_ptr.vmem [resolvable:$true] %s109_s29 }
  0x10   :  { %74 = vmatpush.msra.mxu0 %v52_v1  ;;  %163 = vmatpush.msra.mxu1 %v52_v1  ;;  %s309_s5 = smov 112   ;;  %s310_s2 = smov [#allocation8]  }
  0x11   :  { %s122_s6 = sshll.u32 %s310_s2, 4  ;;  %s124_s9 = sshll.u32 %s376_s3, 4  ;;  %s123_s6 = int_to_ptr.vmem [resolvable:$true] %s122_s6  ;;  %s125_s9 = int_to_ptr.hbm [resolvable:$true] %s124_s9 }
  0x12   :  { %75 = vmatpush.msra.mxu0 %v51_v2  ;;  %164 = vmatpush.msra.mxu1 %v51_v2  ;;  %s311_s10 = smov [#allocation10]   ;;  %s137_s14 = sshll.u32 %s377_s4, 4  ;;  %s138_s14 = int_to_ptr.hbm [resolvable:$true] %s137_s14 }
  0x13   :  { %s135_s11 = sshll.u32 %s311_s10, 4  ;;  %s136_s11 = int_to_ptr.vmem [resolvable:$true] %s135_s11 }
  0x14   :  { %76 = vmatpush.msra.mxu0 %v50_v3  ;;  %165 = vmatpush.msra.mxu1 %v50_v3 }
  0x15   :  { %160 = vmatmul.msk.f32.vlgmr.msra.gmra.mxu0 %vm54_vm0, %v48_v4  ;;  %161 = vmatmul.msk.f32.vlgmr.msra.gmra.mxu1 %vm54_vm0, %v49_v5 }
  0x92   :  { %v78_v6 = vpop.f32.mrf.mxu0  ;;  %v81_v7 = vpop.f32.mrf.mxu1 }
  0x93   :  { %85 = vst.msk [vmem:[#allocation7] sm:$0xff] %vm84_vm1, %v78_v6  ;;  %97 = vrot.lane.b32.xlu1 %v78_v6, %s308_s30  ;;  %89 = vrot.lane.b32.xlu0 %v78_v6, %s309_s5 }
  0x94   :  { %86 = vst.msk [vmem:[#allocation7 + $0x8] sm:$0xff] %vm84_vm1, %v81_v7 }
  0x95   :  { %117 = dma.vmem_to_hbm [thread:$0]  %s110_s29, 256, %s112_s27, [#allocation4], %s304_s23, %s304_s23, %s305_s24  }
  0x9b   :  { %99 = vrot.lane.b32.xlu1 %v81_v7, %s308_s30  ;;  %91 = vrot.lane.b32.xlu0 %v81_v7, %s309_s5 }
 0x105   :  { %v98_v8 = vpop.permute.xlu1 %97  ;;  %v90_v9 = vpop.permute.xlu0 %89 }
 0x106   :  { %103 = vst.msk [vmem:[#allocation10] sm:$0xff] %vm84_vm1, %v98_v8 }
 0x107   :  { %95 = vst.msk [vmem:[#allocation8] sm:$0xff] %vm84_vm1, %v90_v9 }
 0x10d   :  { %v100_v10 = vpop.permute.xlu1 %99  ;;  %v92_v11 = vpop.permute.xlu0 %91 }
 0x10e   :  { %104 = vst.msk [vmem:[#allocation10 + $0x8] sm:$0xff] %vm84_vm1, %v100_v10 }
 0x10f   :  { %96 = vst.msk [vmem:[#allocation8 + $0x8] sm:$0xff] %vm84_vm1, %v92_v11 }
 0x110   :  { %130 = dma.vmem_to_hbm [thread:$0]  %s123_s6, 256, %s125_s9, [#allocation9], %s304_s23, %s304_s23, %s305_s24  }
 0x111   :  { %143 = dma.vmem_to_hbm [thread:$0]  %s136_s11, 256, %s138_s14, [#allocation9], %s304_s23, %s304_s23, %s305_s24  }
 0x112   :  { %299 = dma.done.wait [#allocation4], 256  }
 0x113   :  { %300 = vsyncadd [#allocation4], 4294967040 }
 0x114   :  { %301 = dma.done.wait [#allocation9], 512  }
 0x115   :  { %302 = vsyncadd [#allocation9], 4294966784 }
 0x116   :  { %156 = vsyncpa [#allocation3], 1 }
 0x117   :  { %157 = vsyncpa [#allocation6], 1 }
 0x118   :  { %158 = vsyncpa [#allocation4], 1 }
 0x119   :  { %159 = vsyncpa [#allocation9], 1 }

</bundles_post_ra>
